<compile_context>
chip_gen: v7x
topology: tpu7x:2x2x1
jax: 0.10.0
libtpu: 0.0.40
codegen_flags: <defaults>
</compile_context>

<pallas_src>
import jax
import jax.numpy as jnp
from jax.experimental import pallas as pl
from jax.experimental.pallas import tpu as pltpu


_COLS = 512           # lane-dense last dim (multiple of 128) -> unmasked vst
_MAX_TILE_ROWS = 512  # 512 x 512 f32 tile = 1 MiB per buffer (4 MiB live w/ dbl-buf)


def _invert_kernel(x_ref, o_ref):
    # fn(x) = 1 - x : a single VPU subtract per vreg; kernel is HBM-bound.
    o_ref[...] = (1.0 - x_ref[...]).astype(o_ref.dtype)


def _round_up(n, m):
    return ((n + m - 1) // m) * m


def _invert_pallas(x):
    """Tiled, double-buffered (1 - x) over an arbitrary-shape float array."""
    orig_shape = x.shape
    total = x.size

    rows = pl.cdiv(total, _COLS)
    tile_rows = min(_MAX_TILE_ROWS, _round_up(rows, 8))
    rows_padded = _round_up(rows, tile_rows)
    padded_total = rows_padded * _COLS

    flat = x.reshape(-1)
    if padded_total != total:
        flat = jnp.pad(flat, (0, padded_total - total))
    x2d = flat.reshape(rows_padded, _COLS)

    out2d = pl.pallas_call(
        _invert_kernel,
        out_shape=jax.ShapeDtypeStruct((rows_padded, _COLS), x2d.dtype),
        grid=(rows_padded // tile_rows,),
        in_specs=[pl.BlockSpec((tile_rows, _COLS), lambda i: (i, 0))],
        out_specs=pl.BlockSpec((tile_rows, _COLS), lambda i: (i, 0)),
        compiler_params=pltpu.CompilerParams(
            # Embarrassingly parallel row tiles: lets v7x shard across its
            # 2 TensorCores; a no-op on v5e/v6e.
            dimension_semantics=("parallel",)
        ),
    )(x2d)

    return out2d.reshape(-1)[:total].reshape(orig_shape)


def random_apply(x, prob, key):
    """Pallas implementation of RandomApply(prob, fn=1-x, fn_else=identity)."""
    # One coin flip per call (mirrors Python `random() < self.prob`).
    u = jax.random.uniform(key, (), dtype=jnp.float32)
    take_fn = u < jnp.float32(prob)
    # Identity branch skips the kernel entirely -> zero HBM traffic on
    # (1 - prob) of calls.
    return jax.lax.cond(take_fn, _invert_pallas, lambda v: v, x)


if __name__ == "__main__":
    key = jax.random.PRNGKey(0)
    kx, kcoin = jax.random.split(key)

    # Small NCHW image batch, consistent with the dataloader usage.
    x = jax.random.uniform(kx, (2, 4, 16, 16), dtype=jnp.float32)
    prob = 0.7

    # 1) Exercise the Pallas kernel path directly (runs regardless of coin).
    inv = jax.block_until_ready(_invert_pallas(x))
    assert inv.shape == x.shape and inv.dtype == x.dtype
    assert jnp.allclose(inv, 1.0 - x, atol=1e-6), "invert kernel mismatch"

    # 2) Full module semantics: coin-flip branch selection.
    out = jax.block_until_ready(random_apply(x, prob, kcoin))

    # Reference: same coin flip, same branch semantics in plain JAX.
    u = jax.random.uniform(kcoin, (), dtype=jnp.float32)
    ref = jnp.where(u < jnp.float32(prob), 1.0 - x, x)
    assert out.shape == x.shape and out.dtype == x.dtype
    assert jnp.allclose(out, ref, atol=1e-6), "mismatch vs reference"

    print("KERNEL_OK")
</pallas_src>

<mosaic_0001>
module attributes {stable_mosaic.version = 11 : i64} {
  func.func @_invert_kernel(%arg0: i32, %arg1: memref<8x512xf32, #tpu.memory_space<vmem>>, %arg2: memref<8x512xf32, #tpu.memory_space<vmem>>) attributes {dimension_semantics = [#tpu.dimension_semantics<parallel>], iteration_bounds = array<i64: 1>, scalar_prefetch = 0 : i64, scratch_operands = 0 : i64, tpu.core_type = #tpu.core_type<tc>, window_params = [{transform_indices = @transform_0, window_bounds = array<i64: 8, 512>}, {transform_indices = @transform_1, window_bounds = array<i64: 8, 512>}]} {
    %c0 = arith.constant 0 : index
    %c0_0 = arith.constant 0 : index
    %0 = vector.load %arg1[%c0, %c0_0] : memref<8x512xf32, #tpu.memory_space<vmem>>, vector<8x512xf32>
    %cst = arith.constant 1.000000e+00 : f32
    %1 = vector.broadcast %cst : f32 to vector<8x512xf32>
    %2 = arith.subf %1, %0 : vector<8x512xf32>
    %c0_1 = arith.constant 0 : index
    %c0_2 = arith.constant 0 : index
    %3 = vector.load %arg2[%c0_1, %c0_2] : memref<8x512xf32, #tpu.memory_space<vmem>>, vector<8x512xf32>
    tpu.vector_store %arg2[%c0_1, %c0_2], %2 {strides = array<i32>} : memref<8x512xf32, #tpu.memory_space<vmem>>, vector<8x512xf32>,
    return
  }
  func.func @transform_0(%arg0: i32) -> (i32, i32) {
    %c0_i32 = arith.constant 0 : i32
    %c0_i32_0 = arith.constant 0 : i32
    return %arg0, %c0_i32 : i32, i32
  }
  func.func @transform_1(%arg0: i32) -> (i32, i32) {
    %c0_i32 = arith.constant 0 : i32
    %c0_i32_0 = arith.constant 0 : i32
    return %arg0, %c0_i32 : i32, i32
  }
}

</mosaic_0001>

<bundles_post_ra>
// kernel: tpu_custom_call.1
= control target key start
LH: loop header
LB: loop body
LE: loop exit
PB: predicated region body
PF: predicated region fallthrough
CT: control target
= control target key end

     0   :  { %6 = vsyncpa [#allocation3], 0  ;;  %s134_s0 = inlined_call_operand.hbm [shape: f32[8,512], index: 0, kind: input, shape index: {}]   ;;  %s135_s1 = inlined_call_operand.hbm [shape: f32[8,512], index: 1, kind: output, shape index: {}]  }
   0x1   :  { %7 = vsyncpa [#allocation4], 0  ;;  %s98_s6 = smov [#allocation2]   ;;  %s50_s10 = scalar_lea.hbm %s134_s0, 512 }
   0x2   :  { %s14_s7 = sshll.u32 %s98_s6, 4  ;;  %p51_p0 = scmp.ne.s32.totalorder %s134_s0, %s50_s10  ;;  %s15_s7 = int_to_ptr.vmem [resolvable:$true] %s14_s7 }
   0x3   :  { %p54_p1 = scmp.lt.u32.totalorder %s50_s10, %s134_s0 }
   0x5   :  { %p56_p2 = pnand %p54_p1, %p51_p0 }
   0x7   :  { %59 = shalt.err (!%p56_p2)
}
   0x8   :  { %s60_s15 = scalar_lea.vmem %s15_s7, 512  ;;  %p65_p4 = scmp.lt.s32.totalorder %s15_s7, %s15_s7 }
   0x9   :  { %p61_p3 = scmp.ne.s32.totalorder %s15_s7, %s60_s15  ;;  %p66_p5 = scmp.lt.s32.totalorder %s60_s15, %s60_s15 }
   0xb   :  { %p67_p6 = por %p66_p5, %p65_p4 }
   0xd   :  { %p68_p7 = pnand %p67_p6, %p61_p3 }
   0xf   :  { %71 = shalt.err (!%p68_p7)
}
  0x10   :  { %17 = dma.hbm_to_vmem [thread:$0]  %s134_s0, 512, %s15_s7, [#allocation3]  }
  0x11   :  { %94 = dma.done.wait [#allocation3], 512  }
  0x12   :  { %95 = vsyncadd [#allocation3], 4294966784  ;;  %s99_s18 = smov [#allocation5]   ;;  %v21_v0 = vld [vmem:[#allocation2] sm:$0xff]  ;;  %v22_v1 = vld [vmem:[#allocation2 + $0x8] sm:$0xff] }
  0x13   :  { %s39_s19 = sshll.u32 %s99_s18, 4  ;;  %v23_v2 = vld [vmem:[#allocation2 + $0x10] sm:$0xff]  ;;  %v25_v3 = vsub.f32 1.0, %v21_v0  ;;  %v26_v4 = vsub.f32 1.0, %v22_v1  ;;  %v24_v6 = vld [vmem:[#allocation2 + $0x18] sm:$0xff]  ;;  %s40_s19 = int_to_ptr.vmem [resolvable:$true] %s39_s19 }
  0x14   :  { %v27_v5 = vsub.f32 1.0, %v23_v2  ;;  %v28_v7 = vsub.f32 1.0, %v24_v6  ;;  %s72_s20 = scalar_lea.vmem %s40_s19, 512  ;;  %p77_p9 = scmp.lt.s32.totalorder %s40_s19, %s40_s19 }
  0x15   :  { %29 = vst [vmem:[#allocation5] sm:$0xff] %v25_v3  ;;  %30 = vst [vmem:[#allocation5 + $0x8] sm:$0xff] %v26_v4  ;;  %p73_p8 = scmp.ne.s32.totalorder %s40_s19, %s72_s20  ;;  %p78_p10 = scmp.lt.s32.totalorder %s72_s20, %s72_s20 }
  0x16   :  { %31 = vst [vmem:[#allocation5 + $0x10] sm:$0xff] %v27_v5  ;;  %32 = vst [vmem:[#allocation5 + $0x18] sm:$0xff] %v28_v7 }
  0x17   :  { %p79_p11 = por %p78_p10, %p77_p9 }
  0x19   :  { %p80_p12 = pnand %p79_p11, %p73_p8 }
  0x1b   :  { %83 = shalt.err (!%p80_p12)
}
  0x1c   :  { %s84_s22 = scalar_lea.hbm %s135_s1, 512 }
  0x1d   :  { %p85_p13 = scmp.ne.s32.totalorder %s135_s1, %s84_s22  ;;  %p88_p0 = scmp.lt.u32.totalorder %s84_s22, %s135_s1 }
  0x1f   :  { %p90_p1 = pnand %p88_p0, %p85_p13 }
  0x21   :  { %93 = shalt.err (!%p90_p1)
}
  0x22   :  { %42 = dma.vmem_to_hbm [thread:$0]  %s40_s19, 512, %s135_s1, [#allocation4]  }
  0x23   :  { %96 = dma.done.wait [#allocation4], 512  }
  0x24   :  { %97 = vsyncadd [#allocation4], 4294966784 }
  0x25   :  { %46 = vsyncpa [#allocation3], 1 }
  0x26   :  { %47 = vsyncpa [#allocation4], 1 }

</bundles_post_ra>
